<compile_context>
chip_gen: v6e
topology: v6e:2x2x1
jax: 0.10.0
libtpu: 0.0.40
codegen_flags: <defaults>
</compile_context>

<pallas_src>
import functools

import jax
import jax.numpy as jnp
from jax import lax
from jax.experimental import pallas as pl
from jax.experimental.pallas import tpu as pltpu


def _at_loss_kernel(pred_ref, tgt_ref, out_ref, *, inv_c):
    # pred_ref / tgt_ref: (B, C, HW) block of samples.  out_ref: (1, 8, 128).
    p = pred_ref[...].astype(jnp.float32)
    t = tgt_ref[...].astype(jnp.float32)

    # Attention maps: mean over channels of squared activations -> (B, HW).
    ap = jnp.sum(p * p, axis=1) * inv_c
    at = jnp.sum(t * t, axis=1) * inv_c

    # Per-row L2 normalization (F.normalize: x / max(||x||, eps)), expressed
    # as rsqrt-and-multiply so the transcendental lands on the (idle) EUP.
    eps = 1e-12
    sp = jnp.sum(ap * ap, axis=-1, keepdims=True)            # (B, 1)
    st = jnp.sum(at * at, axis=-1, keepdims=True)
    inv_p = jnp.where(sp > eps * eps, lax.rsqrt(sp), 1.0 / eps)
    inv_t = jnp.where(st > eps * eps, lax.rsqrt(st), 1.0 / eps)

    d = ap * inv_p - at * inv_t
    block_sse = jnp.sum(d * d)                                # scalar partial SSE

    # Broadcast the block's partial sum into a lane-dense (8, 128) output
    # tile; the wrapper reads element [i, 0, 0] of each block.
    out_ref[...] = jnp.full(out_ref.shape, block_sse, dtype=out_ref.dtype)


def at_loss(pred, target, *, block_bytes_target=1 << 20):
    """Pallas implementation of ATLoss.forward. Returns a scalar (f32)."""
    assert pred.shape == target.shape
    N, C, H, W = pred.shape
    HW = H * W

    # Lane-dense layout: (N, C, H*W). Free reshape for contiguous inputs.
    pred2 = pred.reshape(N, C, HW)
    tgt2 = target.reshape(N, C, HW)

    # Batch several samples per grid step so each input tile is ~1 MiB.
    sample_bytes = C * HW * jnp.dtype(pred.dtype).itemsize
    B = int(max(1, min(N, block_bytes_target // max(sample_bytes, 1))))
    num_blocks = pl.cdiv(N, B)
    n_pad = num_blocks * B
    if n_pad != N:
        # Zero padding contributes exactly 0 to the SSE (zero-norm rows stay 0).
        pred2 = jnp.pad(pred2, ((0, n_pad - N), (0, 0), (0, 0)))
        tgt2 = jnp.pad(tgt2, ((0, n_pad - N), (0, 0), (0, 0)))

    # 2 inputs x 2 pipeline buffers x block bytes, plus headroom; capped for
    # v7x's 64 MiB physical VMEM.
    # TODO(synk): for very large single samples (many MiB) on v7x, add a
    # C-splitting grid axis with a (HW,) accumulator instead of bigger tiles.
    vmem_limit = int(min(max(32 << 20, 4 * B * sample_bytes + (4 << 20)), 64 << 20))

    kernel = functools.partial(_at_loss_kernel, inv_c=1.0 / C)
    partial_sse = pl.pallas_call(
        kernel,
        out_shape=jax.ShapeDtypeStruct((num_blocks, 8, 128), jnp.float32),
        grid=(num_blocks,),
        in_specs=[
            pl.BlockSpec((B, C, HW), lambda i: (i, 0, 0)),
            pl.BlockSpec((B, C, HW), lambda i: (i, 0, 0)),
        ],
        out_specs=pl.BlockSpec((1, 8, 128), lambda i: (i, 0, 0)),
        compiler_params=pltpu.CompilerParams(
            dimension_semantics=("parallel",),
            vmem_limit_bytes=vmem_limit,
        ),
    )(pred2, tgt2)

    # MSELoss(reduction='mean') over the (N, H*W) attention maps.
    return jnp.sum(partial_sse[:, 0, 0]) / float(N * HW)


def _at_loss_ref(pred, target):
    """Pure-JAX reference mirroring the PyTorch module."""
    eps = 1e-12
    n = pred.shape[0]
    ap = jnp.mean(pred.astype(jnp.float32) ** 2, axis=1).reshape(n, -1)
    at = jnp.mean(target.astype(jnp.float32) ** 2, axis=1).reshape(n, -1)
    ap = ap / jnp.maximum(jnp.linalg.norm(ap, axis=1, keepdims=True), eps)
    at = at / jnp.maximum(jnp.linalg.norm(at, axis=1, keepdims=True), eps)
    return jnp.mean((ap - at) ** 2)


if __name__ == "__main__":
    key = jax.random.PRNGKey(0)
    k1, k2, k3, k4 = jax.random.split(key, 4)

    # Test 1: spec shape (2, 4, 16, 16) -> single grid block.
    pred = jax.random.normal(k1, (2, 4, 16, 16), dtype=jnp.float32)
    target = jax.random.normal(k2, (2, 4, 16, 16), dtype=jnp.float32)
    loss = jax.block_until_ready(at_loss(pred, target))
    ref = jax.block_until_ready(_at_loss_ref(pred, target))
    assert jnp.allclose(loss, ref, rtol=1e-5, atol=1e-6), (loss, ref)

    # Test 2: exercises multi-block grid + batch padding (N=5, forced B=2).
    pred2 = jax.random.normal(k3, (5, 8, 16, 24), dtype=jnp.float32)
    target2 = jax.random.normal(k4, (5, 8, 16, 24), dtype=jnp.float32)
    loss2 = jax.block_until_ready(
        at_loss(pred2, target2, block_bytes_target=2 * 8 * 16 * 24 * 4)
    )
    ref2 = jax.block_until_ready(_at_loss_ref(pred2, target2))
    assert jnp.allclose(loss2, ref2, rtol=1e-5, atol=1e-6), (loss2, ref2)

    print("KERNEL_OK")
</pallas_src>

<mosaic_0001>
module attributes {stable_mosaic.version = 11 : i64} {
  func.func @_at_loss_kernel(%arg0: i32, %arg1: memref<2x4x256xf32, #tpu.memory_space<vmem>>, %arg2: memref<2x4x256xf32, #tpu.memory_space<vmem>>, %arg3: memref<1x8x128xf32, #tpu.memory_space<vmem>>) attributes {dimension_semantics = [#tpu.dimension_semantics<parallel>], iteration_bounds = array<i64: 1>, scalar_prefetch = 0 : i64, scratch_operands = 0 : i64, tpu.core_type = #tpu.core_type<tc>, window_params = [{transform_indices = @transform_0, window_bounds = array<i64: 2, 4, 256>}, {transform_indices = @transform_1, window_bounds = array<i64: 2, 4, 256>}, {transform_indices = @transform_2, window_bounds = array<i64: 1, 8, 128>}]} {
    %c0 = arith.constant 0 : index
    %c0_0 = arith.constant 0 : index
    %c0_1 = arith.constant 0 : index
    %0 = vector.load %arg1[%c0, %c0_0, %c0_1] : memref<2x4x256xf32, #tpu.memory_space<vmem>>, vector<2x4x256xf32>
    %c0_2 = arith.constant 0 : index
    %c0_3 = arith.constant 0 : index
    %c0_4 = arith.constant 0 : index
    %1 = vector.load %arg2[%c0_2, %c0_3, %c0_4] : memref<2x4x256xf32, #tpu.memory_space<vmem>>, vector<2x4x256xf32>
    %2 = arith.mulf %0, %0 : vector<2x4x256xf32>
    %cst = arith.constant dense<0.000000e+00> : vector<2x256xf32>
    %3 = vector.multi_reduction <add>, %2, %cst [1] : vector<2x4x256xf32> to vector<2x256xf32>
    %cst_5 = arith.constant 2.500000e-01 : f32
    %4 = vector.broadcast %cst_5 : f32 to vector<2x256xf32>
    %5 = arith.mulf %3, %4 : vector<2x256xf32>
    %6 = arith.mulf %1, %1 : vector<2x4x256xf32>
    %cst_6 = arith.constant dense<0.000000e+00> : vector<2x256xf32>
    %7 = vector.multi_reduction <add>, %6, %cst_6 [1] : vector<2x4x256xf32> to vector<2x256xf32>
    %cst_7 = arith.constant 2.500000e-01 : f32
    %8 = vector.broadcast %cst_7 : f32 to vector<2x256xf32>
    %9 = arith.mulf %7, %8 : vector<2x256xf32>
    %10 = arith.mulf %5, %5 : vector<2x256xf32>
    %cst_8 = arith.constant dense<0.000000e+00> : vector<2xf32>
    %11 = vector.multi_reduction <add>, %10, %cst_8 [1] : vector<2x256xf32> to vector<2xf32>
    %12 = vector.shape_cast %11 : vector<2xf32> to vector<2x1xf32>
    %13 = arith.mulf %9, %9 : vector<2x256xf32>
    %cst_9 = arith.constant dense<0.000000e+00> : vector<2xf32>
    %14 = vector.multi_reduction <add>, %13, %cst_9 [1] : vector<2x256xf32> to vector<2xf32>
    %15 = vector.shape_cast %14 : vector<2xf32> to vector<2x1xf32>
    %cst_10 = arith.constant 1.000000e-24 : f32
    %16 = vector.broadcast %cst_10 : f32 to vector<2x1xf32>
    %17 = arith.cmpf ogt, %12, %16 : vector<2x1xf32>
    %18 = math.rsqrt %12 : vector<2x1xf32>
    %cst_11 = arith.constant 9.99999995E+11 : f32
    %19 = vector.broadcast %cst_11 : f32 to vector<2x1xf32>
    %20 = arith.select %17, %18, %19 : vector<2x1xi1>, vector<2x1xf32>
    %cst_12 = arith.constant 1.000000e-24 : f32
    %21 = vector.broadcast %cst_12 : f32 to vector<2x1xf32>
    %22 = arith.cmpf ogt, %15, %21 : vector<2x1xf32>
    %23 = math.rsqrt %15 : vector<2x1xf32>
    %cst_13 = arith.constant 9.99999995E+11 : f32
    %24 = vector.broadcast %cst_13 : f32 to vector<2x1xf32>
    %25 = arith.select %22, %23, %24 : vector<2x1xi1>, vector<2x1xf32>
    %26 = vector.broadcast %20 : vector<2x1xf32> to vector<2x256xf32>
    %27 = arith.mulf %5, %26 : vector<2x256xf32>
    %28 = vector.broadcast %25 : vector<2x1xf32> to vector<2x256xf32>
    %29 = arith.mulf %9, %28 : vector<2x256xf32>
    %30 = arith.subf %27, %29 : vector<2x256xf32>
    %31 = arith.mulf %30, %30 : vector<2x256xf32>
    %32 = vector.shape_cast %31 : vector<2x256xf32> to vector<1x2x256xf32>
    %cst_14 = arith.constant dense<0.000000e+00> : vector<1xf32>
    %33 = vector.multi_reduction <add>, %32, %cst_14 [1, 2] : vector<1x2x256xf32> to vector<1xf32>
    %34 = vector.shape_cast %33 : vector<1xf32> to vector<1x1x1xf32>
    %35 = vector.extract %34[0, 0, 0] : f32 from vector<1x1x1xf32>
    %36 = vector.broadcast %35 : f32 to vector<1x8x128xf32>
    %c0_15 = arith.constant 0 : index
    %c0_16 = arith.constant 0 : index
    %c0_17 = arith.constant 0 : index
    %37 = vector.load %arg3[%c0_15, %c0_16, %c0_17] : memref<1x8x128xf32, #tpu.memory_space<vmem>>, vector<1x8x128xf32>
    tpu.vector_store %arg3[%c0_15, %c0_16, %c0_17], %36 {strides = array<i32>} : memref<1x8x128xf32, #tpu.memory_space<vmem>>, vector<1x8x128xf32>,
    return
  }
  func.func @transform_0(%arg0: i32) -> (i32, i32, i32) {
    %c0_i32 = arith.constant 0 : i32
    %c0_i32_0 = arith.constant 0 : i32
    %c0_i32_1 = arith.constant 0 : i32
    return %arg0, %c0_i32, %c0_i32_0 : i32, i32, i32
  }
  func.func @transform_1(%arg0: i32) -> (i32, i32, i32) {
    %c0_i32 = arith.constant 0 : i32
    %c0_i32_0 = arith.constant 0 : i32
    %c0_i32_1 = arith.constant 0 : i32
    return %arg0, %c0_i32, %c0_i32_0 : i32, i32, i32
  }
  func.func @transform_2(%arg0: i32) -> (i32, i32, i32) {
    %c0_i32 = arith.constant 0 : i32
    %c0_i32_0 = arith.constant 0 : i32
    %c0_i32_1 = arith.constant 0 : i32
    return %arg0, %c0_i32, %c0_i32_0 : i32, i32, i32
  }
}

</mosaic_0001>

<bundles_post_ra>
// kernel: tpu_custom_call.1
= control target key start
LH: loop header
LB: loop body
LE: loop exit
PB: predicated region body
PF: predicated region fallthrough
CT: control target
= control target key end

     0   :  { %7 = vsyncpa [#allocation3], 0  ;;  %s357_s0 = inlined_call_operand.hbm [shape: f32[2,4,256], index: 0, kind: input, shape index: {}]   ;;  %s358_s1 = inlined_call_operand.hbm [shape: f32[2,4,256], index: 1, kind: input, shape index: {}]   ;;  %s359_s2 = inlined_call_operand.hbm [shape: f32[1,8,128], index: 2, kind: output, shape index: {}]  }
   0x1   :  { %8 = vsyncpa [#allocation6], 0 }
   0x2   :  { %9 = vsyncpa [#allocation4], 0  ;;  %s308_s9 = smov [#allocation2]  }
   0x3   :  { %s15_s10 = sshll.u32 %s308_s9, 4  ;;  %s16_s10 = int_to_ptr.vmem [resolvable:$true] %s15_s10 }
   0x4   :  { %s250_s11 = scalar_lea.vmem %s16_s10, 256  ;;  %p255_p1 = scmp.lt.s32.totalorder %s16_s10, %s16_s10 }
   0x5   :  { %p251_p0 = scmp.ne.s32.totalorder %s16_s10, %s250_s11  ;;  %p256_p2 = scmp.lt.s32.totalorder %s250_s11, %s250_s11 }
   0x7   :  { %p257_p3 = por %p256_p2, %p255_p1 }
   0x9   :  { %p258_p4 = pnand %p257_p3, %p251_p0 }
   0xb   :  { %261 = shalt.err (!%p258_p4)
}
   0xc   :  { %s309_s12 = smov 128   ;;  %s310_s13 = smov 8  }
   0xd   :  { %21 = dma.hbm_to_vmem [thread:$0]  %s357_s0, 256, %s16_s10, [#allocation3], %s309_s12, %s309_s12, %s310_s13  }
   0xe   :  { %s311_s16 = smov [#allocation5]  }
   0xf   :  { %s27_s17 = sshll.u32 %s311_s16, 4  ;;  %s28_s17 = int_to_ptr.vmem [resolvable:$true] %s27_s17 }
  0x10   :  { %s270_s18 = scalar_lea.vmem %s28_s17, 256  ;;  %p275_p6 = scmp.lt.s32.totalorder %s28_s17, %s28_s17 }
  0x11   :  { %p271_p5 = scmp.ne.s32.totalorder %s28_s17, %s270_s18  ;;  %p276_p7 = scmp.lt.s32.totalorder %s270_s18, %s270_s18 }
  0x13   :  { %p277_p8 = por %p276_p7, %p275_p6 }
  0x15   :  { %p278_p9 = pnand %p277_p8, %p271_p5 }
  0x17   :  { %281 = shalt.err (!%p278_p9)
}
  0x18   :  { %33 = dma.hbm_to_vmem [thread:$0]  %s358_s1, 256, %s28_s17, [#allocation6], %s309_s12, %s309_s12, %s310_s13  }
  0x19   :  { %302 = dma.done.wait [#allocation3], 256  }
  0x1a   :  { %303 = vsyncadd [#allocation3], 4294967040 }
  0x1b   :  { %304 = dma.done.wait [#allocation6], 256  }
  0x1c   :  { %305 = vsyncadd [#allocation6], 4294967040  ;;  %v40_v0 = vld [vmem:[#allocation2] sm:$0xff]  ;;  %v41_v1 = vld [vmem:[#allocation2 + $0x8] sm:$0xff]  ;;  %vm52_vm0 = vcmask 1043456   ;;  %vm133_vm1 = vcmask 1041409  }
  0x1d   :  { %v42_v2 = vld [vmem:[#allocation5] sm:$0xff]  ;;  %v44_v3 = vmul.f32 %v40_v0, %v40_v0  ;;  %v45_v4 = vmul.f32 %v41_v1, %v41_v1  ;;  %v43_v5 = vld [vmem:[#allocation5 + $0x8] sm:$0xff]  ;;  %vm138_vm2 = vcmask 1041408   ;;  %s312_s0 = smov [#allocation7]  }
  0x1e   :  { %v85_v6 = vmul.f32 %v42_v2, %v42_v2  ;;  %v86_v7 = vmul.f32 %v43_v5, %v43_v5  ;;  %s221_s1 = sshll.u32 %s312_s0, 4  ;;  %s222_s1 = int_to_ptr.vmem [resolvable:$true] %s221_s1 }
  0x1f   :  { %v48_v8 = vcombine.high %v44_v3, %v44_v3  ;;  %v49_v9 = vcombine.high %v45_v4, %v45_v4  ;;  %v53_v10 = vsel %vm52_vm0, %v44_v3, 0.0  ;;  %v67_v11 = vsel %vm52_vm0, %v45_v4, 0.0  ;;  %s282_s22 = scalar_lea.vmem %s222_s1, 128  ;;  %p287_p11 = scmp.lt.s32.totalorder %s222_s1, %s222_s1 }
  0x20   :  { %v54_v12 = vrot.slane %v53_v10, 4  ;;  %v68_v13 = vrot.slane %v67_v11, 4  ;;  %v89_v14 = vcombine.high %v85_v6, %v85_v6  ;;  %v90_v15 = vcombine.high %v86_v7, %v86_v7  ;;  %p283_p10 = scmp.ne.s32.totalorder %s222_s1, %s282_s22  ;;  %p288_p12 = scmp.lt.s32.totalorder %s282_s22, %s282_s22 }
  0x21   :  { %v60_v16 = vsel %vm52_vm0, %v48_v8, 0.0  ;;  %v74_v17 = vsel %vm52_vm0, %v49_v9, 0.0  ;;  %v93_v18 = vsel %vm52_vm0, %v85_v6, 0.0  ;;  %v107_v19 = vsel %vm52_vm0, %v86_v7, 0.0 }
  0x22   :  { %v55_v20 = vadd.f32 %v54_v12, %v53_v10  ;;  %v61_v21 = vrot.slane %v60_v16, 4  ;;  %v69_v22 = vadd.f32 %v68_v13, %v67_v11  ;;  %v75_v23 = vrot.slane %v74_v17, 4  ;;  %p289_p13 = por %p288_p12, %p287_p11 }
  0x23   :  { %v94_v24 = vrot.slane %v93_v18, 4  ;;  %v100_v25 = vsel %vm52_vm0, %v89_v14, 0.0  ;;  %v108_v26 = vrot.slane %v107_v19, 4  ;;  %v114_v27 = vsel %vm52_vm0, %v90_v15, 0.0 }
  0x24   :  { %v56_v28 = vrot.slane %v55_v20, 2  ;;  %v62_v29 = vadd.f32 %v61_v21, %v60_v16  ;;  %v70_v30 = vrot.slane %v69_v22, 2  ;;  %v76_v31 = vadd.f32 %v75_v23, %v74_v17  ;;  %p290_p0 = pnand %p289_p13, %p283_p10 }
  0x25   :  { %v95_v32 = vadd.f32 %v94_v24, %v93_v18  ;;  %v101_v33 = vrot.slane %v100_v25, 4  ;;  %v109_v34 = vadd.f32 %v108_v26, %v107_v19  ;;  %v115_v35 = vrot.slane %v114_v27, 4 }
  0x26   :  { %v57_v36 = vadd.f32 %v56_v28, %v55_v20  ;;  %v63_v37 = vrot.slane %v62_v29, 2  ;;  %v71_v38 = vadd.f32 %v70_v30, %v69_v22  ;;  %v77_v39 = vrot.slane %v76_v31, 2 }
  0x27   :  { %v96_v40 = vrot.slane %v95_v32, 2  ;;  %v102_v41 = vadd.f32 %v101_v33, %v100_v25  ;;  %v110_v42 = vrot.slane %v109_v34, 2  ;;  %v116_v43 = vadd.f32 %v115_v35, %v114_v27 }
  0x28   :  { %v58_v44 = vrot.slane %v57_v36, 1  ;;  %v64_v45 = vadd.f32 %v63_v37, %v62_v29  ;;  %v72_v46 = vrot.slane %v71_v38, 1  ;;  %v78_v47 = vadd.f32 %v77_v39, %v76_v31 }
  0x29   :  { %v97_v48 = vadd.f32 %v96_v40, %v95_v32  ;;  %v103_v49 = vrot.slane %v102_v41, 2  ;;  %v111_v50 = vadd.f32 %v110_v42, %v109_v34  ;;  %v117_v51 = vrot.slane %v116_v43, 2 }
  0x2a   :  { %v59_v52 = vadd.f32 %v58_v44, %v57_v36  ;;  %v65_v53 = vrot.slane %v64_v45, 1  ;;  %v73_v54 = vadd.f32 %v72_v46, %v71_v38  ;;  %v79_v55 = vrot.slane %v78_v47, 1 }
  0x2b   :  { %v98_v56 = vrot.slane %v97_v48, 1  ;;  %v104_v57 = vadd.f32 %v103_v49, %v102_v41  ;;  %v112_v58 = vrot.slane %v111_v50, 1  ;;  %v118_v59 = vadd.f32 %v117_v51, %v116_v43 }
  0x2c   :  { %v66_v60 = vadd.f32 %v65_v53, %v64_v45  ;;  %v80_v61 = vadd.f32 %v79_v55, %v78_v47  ;;  %v81_v62 = vmul.f32 0.25, %v59_v52  ;;  %v83_v63 = vmul.f32 0.25, %v73_v54 }
  0x2d   :  { %v99_v0 = vadd.f32 %v98_v56, %v97_v48  ;;  %v105_v1 = vrot.slane %v104_v57, 1  ;;  %v113_v2 = vadd.f32 %v112_v58, %v111_v50  ;;  %v119_v3 = vrot.slane %v118_v59, 1 }
  0x2e   :  { %v82_v4 = vmul.f32 0.25, %v66_v60  ;;  %v84_v5 = vmul.f32 0.25, %v80_v61  ;;  %v125_v6 = vmul.f32 %v81_v62, %v81_v62  ;;  %v127_v7 = vmul.f32 %v83_v63, %v83_v63 }
  0x2f   :  { %v106_v8 = vadd.f32 %v105_v1, %v104_v57  ;;  %v120_v9 = vadd.f32 %v119_v3, %v118_v59  ;;  %v121_v10 = vmul.f32 0.25, %v99_v0  ;;  %v123_v11 = vmul.f32 0.25, %v113_v2 }
  0x30   :  { %v126_v12 = vmul.f32 %v82_v4, %v82_v4  ;;  %v128_v13 = vmul.f32 %v84_v5, %v84_v5  ;;  %v134_v14 = vsel %vm133_vm1, %v127_v7, %v125_v6 }
  0x31   :  { %v139_v15 = vsel %vm138_vm2, %v134_v14, 0.0  ;;  %v122_v16 = vmul.f32 0.25, %v106_v8  ;;  %v124_v17 = vmul.f32 0.25, %v120_v9  ;;  %v144_v18 = vmul.f32 %v121_v10, %v121_v10 }
  0x32   :  { %v135_v19 = vsel %vm133_vm1, %v128_v13, %v126_v12  ;;  %v146_v20 = vmul.f32 %v123_v11, %v123_v11 }
  0x33   :  { %v140_v21 = vsel %vm138_vm2, %v135_v19, 0.0  ;;  %v145_v22 = vmul.f32 %v122_v16, %v122_v16  ;;  %v147_v23 = vmul.f32 %v124_v17, %v124_v17 }
  0x34   :  { %v141_v24 = vadd.f32 %v140_v21, %v139_v15  ;;  %v152_v25 = vsel %vm133_vm1, %v146_v20, %v144_v18 }
  0x35   :  { %v153_v26 = vsel %vm133_vm1, %v147_v23, %v145_v22  ;;  %v156_v27 = vsel %vm138_vm2, %v152_v25, 0.0 }
  0x36   :  { %142 = vadd.xlane.f32.xlu0 %v141_v24  ;;  %v157_v28 = vsel %vm138_vm2, %v153_v26, 0.0 }
  0x37   :  { %v158_v29 = vadd.f32 %v157_v28, %v156_v27 }
  0x3a   :  { %159 = vadd.xlane.f32.xlu0 %v158_v29 }
  0xbf   :  { %v143_v30 = vpop.xlane.xlu0 %142 }
  0xc0   :  { %238 = vrsqrt.f32 %v143_v30  ;;  %vm161_vm3 = vcmp.gt.f32.partialorder %v143_v30, 1e-24 }
  0xc3   :  { %v160_v31 = vpop.xlane.xlu0 %159 }
  0xc4   :  { %240 = vrsqrt.f32 %v160_v31  ;;  %vm164_vm4 = vcmp.gt.f32.partialorder %v160_v31, 1e-24 }
  0xcd   :  { %v239_v32 = vpop.eup %238 }
  0xce   :  { %v163_v33 = vsel %vm161_vm3, %v239_v32, 1e+12 }
  0xcf   :  { %v168_v35 = vrot.slane %v163_v33, 1  ;;  %v171_v40 = vmul.f32 %v163_v33, %v81_v62  ;;  %v172_v41 = vmul.f32 %v163_v33, %v82_v4 }
  0xd1   :  { %v241_v34 = vpop.eup %240  ;;  %v173_v42 = vmul.f32 %v168_v35, %v83_v63  ;;  %v174_v43 = vmul.f32 %v168_v35, %v84_v5 }
  0xd2   :  { %v166_v36 = vsel %vm164_vm4, %v241_v34, 1e+12 }
  0xd3   :  { %v176_v37 = vrot.slane %v166_v36, 1  ;;  %v179_v38 = vmul.f32 %v166_v36, %v121_v10  ;;  %v180_v39 = vmul.f32 %v166_v36, %v122_v16 }
  0xd5   :  { %v181_v44 = vmul.f32 %v176_v37, %v123_v11  ;;  %v182_v45 = vmul.f32 %v176_v37, %v124_v17  ;;  %v183_v46 = vsub.f32 %v171_v40, %v179_v38  ;;  %v184_v47 = vsub.f32 %v172_v41, %v180_v39 }
  0xd7   :  { %v185_v48 = vsub.f32 %v173_v42, %v181_v44  ;;  %v186_v49 = vsub.f32 %v174_v43, %v182_v45  ;;  %v187_v52 = vmul.f32 %v183_v46, %v183_v46  ;;  %v188_v53 = vmul.f32 %v184_v47, %v184_v47 }
  0xd9   :  { %v189_v50 = vmul.f32 %v185_v48, %v185_v48  ;;  %v190_v51 = vmul.f32 %v186_v49, %v186_v49 }
  0xdb   :  { %v195_v54 = vrot.slane %v189_v50, 7  ;;  %v197_v55 = vrot.slane %v190_v51, 7 }
  0xdd   :  { %v196_v56 = vsel %vm133_vm1, %v195_v54, %v187_v52  ;;  %v198_v57 = vsel %vm133_vm1, %v197_v55, %v188_v53 }
  0xde   :  { %v201_v58 = vsel %vm138_vm2, %v196_v56, 0.0  ;;  %v202_v59 = vsel %vm138_vm2, %v198_v57, 0.0 }
  0xdf   :  { %v203_v60 = vadd.f32 %v202_v59, %v201_v58 }
  0xe1   :  { %204 = vadd.xlane.f32.xlu1 %v203_v60 }
 0x16a   :  { %v205_v61 = vpop.xlane.xlu1 %204 }
 0x16b   :  { %v206_v62 = vrot.slane %v205_v61, 4 }
 0x16d   :  { %v207_v63 = vadd.f32 %v206_v62, %v205_v61 }
 0x16f   :  { %v208_v0 = vrot.slane %v207_v63, 2 }
 0x171   :  { %v209_v1 = vadd.f32 %v208_v0, %v207_v63 }
 0x173   :  { %v210_v2 = vrot.slane %v209_v1, 1 }
 0x175   :  { %v211_v3 = vadd.f32 %v210_v2, %v209_v1 }
 0x177   :  { %231 = vpush %v211_v3 }
 0x1a8   :  { %s232_s21 = spop %231 }
 0x1a9   :  { %v213_v4 = vstv %s232_s21 }
 0x1aa   :  { %214 = vst [vmem:[#allocation7] sm:$0xff] %v213_v4 }
 0x1ab   :  { %293 = shalt.err (!%p290_p0)
}
 0x1ac   :  { %224 = dma.vmem_to_hbm [thread:$0]  %s222_s1, 128, %s359_s2, [#allocation4]  }
 0x1ad   :  { %306 = dma.done.wait [#allocation4], 128  }
 0x1ae   :  { %307 = vsyncadd [#allocation4], 4294967168 }
 0x1af   :  { %228 = vsyncpa [#allocation3], 1 }
 0x1b0   :  { %229 = vsyncpa [#allocation6], 1 }
 0x1b1   :  { %230 = vsyncpa [#allocation4], 1 }

</bundles_post_ra>
